<compile_context>
chip_gen: v7x
topology: tpu7x:2x2x1
jax: 0.10.0
libtpu: 0.0.40
codegen_flags: <defaults>
</compile_context>

<pallas_src>
import math
from typing import NamedTuple

import jax
import jax.numpy as jnp
import numpy as np
from jax.experimental import pallas as pl
from jax.experimental.pallas import tpu as pltpu


def _round_up(a, m):
    return ((a + m - 1) // m) * m


# ---------------------------------------------------------------------------
# One-time feature probe: is pl.Buffered(1) (single-buffered resident params)
# accepted by this jax/Mosaic?  The probe can only mark the feature
# unsupported; it never masks errors of the real kernel.
# ---------------------------------------------------------------------------
_SINGLE_BUFFER_OK = None


def _single_buffer_params_supported():
    global _SINGLE_BUFFER_OK
    if _SINGLE_BUFFER_OK is not None:
        return _SINGLE_BUFFER_OK

    def probe_kernel(x_ref, w_ref, o_ref):
        o_ref[...] = jnp.dot(x_ref[...], w_ref[...],
                             preferred_element_type=jnp.float32)

    try:
        call = pl.pallas_call(
            probe_kernel,
            out_shape=jax.ShapeDtypeStruct((8, 128), jnp.float32),
            grid_spec=pltpu.PrefetchScalarGridSpec(
                num_scalar_prefetch=0,
                grid=(2,),
                in_specs=[
                    pl.BlockSpec((8, 128), lambda i: (0, 0)),
                    pl.BlockSpec((128, 128), lambda i: (0, 0),
                                 pipeline_mode=pl.Buffered(1)),
                ],
                out_specs=pl.BlockSpec((8, 128), lambda i: (0, 0)),
            ),
        )
        jax.jit(call).lower(
            jax.ShapeDtypeStruct((8, 128), jnp.float32),
            jax.ShapeDtypeStruct((128, 128), jnp.float32),
        ).compile()
        _SINGLE_BUFFER_OK = True
    except Exception:
        _SINGLE_BUFFER_OK = False
    return _SINGLE_BUFFER_OK


def _vmem_cap_bytes():
    """Usable per-kernel VMEM cap: physical capacity minus ~16 MiB headroom,
    48 MiB fallback (safe on every generation; v7x has only 64 MiB)."""
    try:
        cap = int(pltpu.get_tpu_info().vmem_capacity_bytes) - (16 << 20)
    except Exception:
        cap = 48 << 20
    return max(cap, 32 << 20)


# ---------------------------------------------------------------------------
# Parameter preparation (run ONCE, not per forward call)
# ---------------------------------------------------------------------------
class SirenParams(NamedTuple):
    weights: tuple   # per layer: (fold*d_in, fold*d_out), omega_0 folded in
    biases: tuple    # per layer: (1, fold*d_out), f32, omega_0 folded in
    dims: tuple      # (d_0, d_1, ..., d_L) unfolded feature sizes
    fold: int        # row-fold factor used for lane-dense output stores


def _pick_fold(dims, max_folded_weight_bytes):
    """Smallest row-fold f so the output's last dim (f*d_last) is a multiple of
    128 lanes.  Falls back to 1 (masked stores) when already lane-dense or the
    block-diagonal weight blow-up exceeds the byte budget."""
    d_last = dims[-1]
    if d_last % 128 == 0:
        return 1
    f = 128 // math.gcd(d_last, 128)
    folded = sum(f * f * dims[l] * dims[l + 1] * 4 for l in range(len(dims) - 1))
    if folded > max_folded_weight_bytes:
        # TODO(synk): tiny-out final layers with wide hidden dims fall back to
        # masked lane stores; a transposed-output kernel would be needed there.
        return 1
    return f


def prepare_siren_params(layers, *, omega_0=30.0, compute_dtypes=None,
                         max_folded_weight_bytes=4 << 20):
    """One-time prep for a stack of consecutive SineLayers.

    layers: sequence of (weight, bias) in torch nn.Linear layout
            (weight: (out, in), bias: (out,) or None).
    omega_0: float or per-layer sequence.
    compute_dtypes: None, or per-layer sequence (None entries keep f32).  Per
            the perf review, restrict bf16 to hidden layers.
    """
    n_layers = len(layers)
    omegas = (list(omega_0) if isinstance(omega_0, (list, tuple))
              else [omega_0] * n_layers)
    if compute_dtypes is None or not isinstance(compute_dtypes, (list, tuple)):
        compute_dtypes = [compute_dtypes] * n_layers

    dims = [int(layers[0][0].shape[1])] + [int(w.shape[0]) for w, _ in layers]
    fold = _pick_fold(dims, max_folded_weight_bytes)

    ws, bs = [], []
    for l, (w, b) in enumerate(layers):
        d_in, d_out = dims[l], dims[l + 1]
        assert w.shape == (d_out, d_in), f"layer {l} weight shape mismatch"
        if b is None:
            b = jnp.zeros((d_out,), jnp.float32)
        om = jnp.float32(omegas[l])
        w_t = (om * w.astype(jnp.float32)).T                  # (in, out)
        b_r = (om * b.astype(jnp.float32)).reshape(1, d_out)
        if fold > 1:                                          # block-diagonal fold
            wf = jnp.zeros((fold * d_in, fold * d_out), jnp.float32)
            for g in range(fold):
                wf = wf.at[g * d_in:(g + 1) * d_in,
                           g * d_out:(g + 1) * d_out].set(w_t)
            w_t = wf
            b_r = jnp.tile(b_r, (1, fold))
        if compute_dtypes[l] is not None:
            w_t = w_t.astype(compute_dtypes[l])               # bias stays f32
        ws.append(w_t)
        bs.append(b_r)
    return SirenParams(tuple(ws), tuple(bs), tuple(dims), fold)


# ---------------------------------------------------------------------------
# Kernel: one row tile through the whole (fused) SineLayer stack.
# ---------------------------------------------------------------------------
def _make_siren_kernel(n_layers, n_chunks, chunk_rows):
    def kernel(*refs):
        x_ref = refs[0]                 # (rows, fold*d_0)
        o_ref = refs[-1]                # (rows, fold*d_L)
        params = refs[1:-1]             # w_0, b_0, w_1, b_1, ...
        # Row sub-chunks: the MXU dot of chunk c+1 overlaps the VPU/EUP sin of
        # chunk c (all ops live in one basic block for the LLO scheduler).
        for c in range(n_chunks):
            r0 = c * chunk_rows         # static -> aligned static slice
            z = x_ref[pl.ds(r0, chunk_rows), :]
            for l in range(n_layers):
                w = params[2 * l][...]
                b = params[2 * l + 1][...]
                z = jnp.dot(z.astype(w.dtype), w,
                            preferred_element_type=jnp.float32)
                # NOTE(perf review): confirm from a bundle dump whether sin
                # lowers to the EUP or a VPU polynomial before further tuning.
                z = jnp.sin(z + b)      # bias add + sin in f32
            o_ref[pl.ds(r0, chunk_rows), :] = z.astype(o_ref.dtype)
    return kernel


def siren_forward(x, params: SirenParams, *, tile_rows=2048, n_chunks=2,
                  out_dtype=None, min_row_blocks=8):
    """x: (N, d_0) -> fused SineLayer stack: sin(w_L(...sin(w_0(x))...)).

    One pallas_call for the whole stack; intermediate activations stay in VMEM.
    """
    n, d_in = x.shape
    dims, fold = params.dims, params.fold
    if d_in != dims[0]:
        raise ValueError(f"in_features mismatch: {d_in} vs {dims[0]}")
    n_layers = len(params.weights)
    out_dtype = jnp.dtype(out_dtype or x.dtype)
    d_out = dims[-1]

    # Corner case only: the row-fold reshape needs N % fold == 0 (<= fold-1 rows).
    pad_rows = (-n) % fold
    if pad_rows:
        x = jnp.pad(x, ((0, pad_rows), (0, 0)))
    rows_total = x.shape[0] // fold
    k0 = fold * dims[0]
    lanes = fold * d_out
    x_f = x.reshape(rows_total, k0)          # row-major fold: layout-preserving

    # Row tile: large (amortizes ~0.35us/step pipeline overhead), multiple of
    # 8*n_chunks, shrunk so moderate inputs still give >= min_row_blocks grid
    # steps (v7x megacore balance, DMA overlap).  Ragged last block is handled
    # by Pallas -- no padding to the tile size, no output slice.
    n_chunks = max(int(n_chunks), 1)
    row_align = 8 * n_chunks
    rows = max(row_align, (int(tile_rows) // row_align) * row_align)
    if rows_total >= min_row_blocks * row_align:
        rows = min(rows, max(row_align,
                             (rows_total // min_row_blocks) // row_align * row_align))
    rows = min(rows, _round_up(rows_total, row_align))
    chunk_rows = rows // n_chunks
    grid = (pl.cdiv(rows_total, rows),)

    single_buffer = _single_buffer_params_supported()
    resident = {"pipeline_mode": pl.Buffered(1)} if single_buffer else {}

    in_specs = [pl.BlockSpec((rows, k0), lambda i: (i, 0))]
    flat_params = []
    for w, b in zip(params.weights, params.biases):
        in_specs.append(pl.BlockSpec(w.shape, lambda i: (0, 0), **resident))
        in_specs.append(pl.BlockSpec(b.shape, lambda i: (0, 0), **resident))
        flat_params += [w, b]
    out_spec = pl.BlockSpec((rows, lanes), lambda i: (i, 0))

    # VMEM budget: double-buffered x/out tiles, resident params (x1 or x2),
    # in-kernel activation temporaries, plus headroom; generation-aware cap.
    itemsize = x_f.dtype.itemsize
    x_bytes = rows * k0 * itemsize
    o_bytes = rows * lanes * out_dtype.itemsize
    p_bytes = sum(int(a.size) * a.dtype.itemsize for a in flat_params)
    act_bytes = 2 * chunk_rows * max(fold * d for d in dims) * 4
    need = 2 * (x_bytes + o_bytes) + (1 if single_buffer else 2) * p_bytes + act_bytes
    vmem_limit = int(min(max(need + (8 << 20), 32 << 20), _vmem_cap_bytes()))

    cost = pl.CostEstimate(
        flops=2 * rows_total * fold * fold
              * sum(dims[l] * dims[l + 1] for l in range(n_layers)),
        transcendentals=n * sum(dims[1:]),
        bytes_accessed=int(x_f.size * itemsize + p_bytes
                           + rows_total * lanes * out_dtype.itemsize),
    )

    y_f = pl.pallas_call(
        _make_siren_kernel(n_layers, n_chunks, chunk_rows),
        out_shape=jax.ShapeDtypeStruct((rows_total, lanes), out_dtype),
        grid_spec=pltpu.PrefetchScalarGridSpec(
            num_scalar_prefetch=0,
            grid=grid,
            in_specs=in_specs,
            out_specs=out_spec,
        ),
        compiler_params=pltpu.CompilerParams(
            dimension_semantics=("parallel",),   # megacore-shards row blocks
            vmem_limit_bytes=vmem_limit,
        ),
        cost_estimate=cost,
    )(x_f, *flat_params)

    y = y_f.reshape(rows_total * fold, d_out)    # undo row fold (layout-preserving)
    return y[:n] if pad_rows else y


def init_sine_layer_params(key, in_features, out_features, *, is_first=False,
                           omega_0=30.0, dtype=jnp.float32):
    """Deterministic init matching torch SineLayer.init_weights() layouts."""
    kw, kb = jax.random.split(key)
    if is_first:
        bound_w = 1.0 / in_features
    else:
        bound_w = float(np.sqrt(6.0 / in_features)) / omega_0
    weight = jax.random.uniform(kw, (out_features, in_features), dtype,
                                minval=-bound_w, maxval=bound_w)
    bound_b = 1.0 / float(np.sqrt(in_features))   # nn.Linear default bias init
    bias = jax.random.uniform(kb, (out_features,), dtype,
                              minval=-bound_b, maxval=bound_b)
    return weight, bias


if __name__ == "__main__":
    # High-precision XLA matmuls for the pure-JAX reference (the kernel always
    # accumulates in f32); keeps the comparison meaningful at omega_0 = 30.
    jax.config.update("jax_default_matmul_precision", "highest")

    key = jax.random.PRNGKey(0)
    k_x, k_0, k_1, k_2 = jax.random.split(key, 4)
    omega_0 = 30.0
    d_in, hidden = 3, 32
    n = 1000

    x = jax.random.uniform(k_x, (n, d_in), jnp.float32, minval=-1.0, maxval=1.0)
    w0, b0 = init_sine_layer_params(k_0, d_in, hidden, is_first=True, omega_0=omega_0)
    w1, b1 = init_sine_layer_params(k_1, hidden, hidden, omega_0=omega_0)
    w2, b2 = init_sine_layer_params(k_2, hidden, hidden, omega_0=omega_0)

    def reference(xs, layers):
        z = xs
        for w, b in layers:
            z = jnp.sin(omega_0 * (z @ w.T + b[None, :]))
        return z

    # 1) Single SineLayer (exact torch SineLayer.forward semantics).
    #    N = 998 is not a multiple of fold(=4): exercises the <= fold-1 row pad
    #    corner case plus the ragged last grid block.
    x_odd = x[:998]
    p_single = prepare_siren_params([(w0, b0)], omega_0=omega_0)
    y1 = jax.block_until_ready(siren_forward(x_odd, p_single))
    np.testing.assert_allclose(np.asarray(y1),
                               np.asarray(reference(x_odd, [(w0, b0)])),
                               rtol=2e-3, atol=2e-3)

    # 2) Three SineLayers fused into ONE pallas_call (intermediates stay in VMEM).
    #    N = 1000 is a multiple of fold -> no wrapper pad and no output slice.
    layers = [(w0, b0), (w1, b1), (w2, b2)]
    p_stack = prepare_siren_params(layers, omega_0=omega_0)
    y = jax.block_until_ready(siren_forward(x, p_stack))
    np.testing.assert_allclose(np.asarray(y), np.asarray(reference(x, layers)),
                               rtol=5e-3, atol=5e-3)

    # 3) bf16 weights on the hidden layers only (first coordinate layer stays
    #    f32; accumulation and the sin argument are f32 inside the kernel).
    #    SIREN amplifies rounding by omega_0, so only a loose sanity check.
    p_bf16 = prepare_siren_params(
        layers, omega_0=omega_0,
        compute_dtypes=[None, jnp.bfloat16, jnp.bfloat16])
    y_bf16 = jax.block_until_ready(
        siren_forward(x, p_bf16, out_dtype=jnp.float32))
    assert y_bf16.shape == (n, hidden)
    assert bool(jnp.all(jnp.isfinite(y_bf16)))
    assert float(jnp.mean(jnp.abs(y_bf16 - reference(x, layers)))) < 0.1

    print("KERNEL_OK")
</pallas_src>

<mosaic_0001>
module attributes {stable_mosaic.version = 11 : i64} {
  func.func @kernel(%arg0: i32, %arg1: memref<16x12xf32, #tpu.memory_space<vmem>>, %arg2: memref<12x128xf32, #tpu.memory_space<vmem>>, %arg3: memref<1x128xf32, #tpu.memory_space<vmem>>, %arg4: memref<16x128xf32, #tpu.memory_space<vmem>>) attributes {dimension_semantics = [#tpu.dimension_semantics<parallel>], iteration_bounds = array<i64: 16>, scalar_prefetch = 0 : i64, scratch_operands = 0 : i64, tpu.core_type = #tpu.core_type<tc>, window_params = [{transform_indices = @transform_0, window_bounds = array<i64: 16, 12>}, {pipeline_mode = #tpu.pipeline_mode<synchronous>, transform_indices = @transform_1, window_bounds = array<i64: 12, 128>}, {pipeline_mode = #tpu.pipeline_mode<synchronous>, transform_indices = @transform_2, window_bounds = array<i64: 1, 128>}, {transform_indices = @transform_3, window_bounds = array<i64: 16, 128>}]} {
    %c0 = arith.constant 0 : index
    %c0_0 = arith.constant 0 : index
    %0 = vector.load %arg1[%c0, %c0_0] : memref<16x12xf32, #tpu.memory_space<vmem>>, vector<8x12xf32>
    %c0_1 = arith.constant 0 : index
    %c0_2 = arith.constant 0 : index
    %1 = vector.load %arg2[%c0_1, %c0_2] : memref<12x128xf32, #tpu.memory_space<vmem>>, vector<12x128xf32>
    %c0_3 = arith.constant 0 : index
    %c0_4 = arith.constant 0 : index
    %2 = vector.load %arg3[%c0_3, %c0_4] : memref<1x128xf32, #tpu.memory_space<vmem>>, vector<1x128xf32>
    %cst = arith.constant dense<0.000000e+00> : vector<8x128xf32>
    %3 = tpu.matmul %0, %1, %cst {dimension_numbers = #tpu.dot_dimension_numbers<[1], [0], [0], [1], [0, 0, 1, 1], [], []>, precision = #tpu.contract_precision<fp32>} : vector<8x12xf32>, vector<12x128xf32>, vector<8x128xf32> -> vector<8x128xf32>
    %4 = vector.broadcast %2 : vector<1x128xf32> to vector<8x128xf32>
    %5 = arith.addf %3, %4 : vector<8x128xf32>
    %6 = math.sin %5 : vector<8x128xf32>
    %c0_5 = arith.constant 0 : index
    %c0_6 = arith.constant 0 : index
    %7 = vector.load %arg4[%c0_5, %c0_6] : memref<16x128xf32, #tpu.memory_space<vmem>>, vector<8x128xf32>
    tpu.vector_store %arg4[%c0_5, %c0_6], %6 {strides = array<i32>} : memref<16x128xf32, #tpu.memory_space<vmem>>, vector<8x128xf32>,
    %c8 = arith.constant 8 : index
    %c0_7 = arith.constant 0 : index
    %8 = vector.load %arg1[%c8, %c0_7] : memref<16x12xf32, #tpu.memory_space<vmem>>, vector<8x12xf32>
    %c0_8 = arith.constant 0 : index
    %c0_9 = arith.constant 0 : index
    %9 = vector.load %arg2[%c0_8, %c0_9] : memref<12x128xf32, #tpu.memory_space<vmem>>, vector<12x128xf32>
    %c0_10 = arith.constant 0 : index
    %c0_11 = arith.constant 0 : index
    %10 = vector.load %arg3[%c0_10, %c0_11] : memref<1x128xf32, #tpu.memory_space<vmem>>, vector<1x128xf32>
    %cst_12 = arith.constant dense<0.000000e+00> : vector<8x128xf32>
    %11 = tpu.matmul %8, %9, %cst_12 {dimension_numbers = #tpu.dot_dimension_numbers<[1], [0], [0], [1], [0, 0, 1, 1], [], []>, precision = #tpu.contract_precision<fp32>} : vector<8x12xf32>, vector<12x128xf32>, vector<8x128xf32> -> vector<8x128xf32>
    %12 = vector.broadcast %10 : vector<1x128xf32> to vector<8x128xf32>
    %13 = arith.addf %11, %12 : vector<8x128xf32>
    %14 = math.sin %13 : vector<8x128xf32>
    %c8_13 = arith.constant 8 : index
    %c0_14 = arith.constant 0 : index
    %15 = vector.load %arg4[%c8_13, %c0_14] : memref<16x128xf32, #tpu.memory_space<vmem>>, vector<8x128xf32>
    tpu.vector_store %arg4[%c8_13, %c0_14], %14 {strides = array<i32>} : memref<16x128xf32, #tpu.memory_space<vmem>>, vector<8x128xf32>,
    return
  }
  func.func @transform_0(%arg0: i32) -> (i32, i32) {
    %c0_i32 = arith.constant 0 : i32
    %c0_i32_0 = arith.constant 0 : i32
    return %arg0, %c0_i32 : i32, i32
  }
  func.func @transform_1(%arg0: i32) -> (i32, i32) {
    %c0_i32 = arith.constant 0 : i32
    %c0_i32_0 = arith.constant 0 : i32
    %c0_i32_1 = arith.constant 0 : i32
    return %c0_i32, %c0_i32_0 : i32, i32
  }
  func.func @transform_2(%arg0: i32) -> (i32, i32) {
    %c0_i32 = arith.constant 0 : i32
    %c0_i32_0 = arith.constant 0 : i32
    %c0_i32_1 = arith.constant 0 : i32
    return %c0_i32, %c0_i32_0 : i32, i32
  }
  func.func @transform_3(%arg0: i32) -> (i32, i32) {
    %c0_i32 = arith.constant 0 : i32
    %c0_i32_0 = arith.constant 0 : i32
    return %arg0, %c0_i32 : i32, i32
  }
}

</mosaic_0001>

<bundles_post_ra>
// kernel: tpu_custom_call.1
= control target key start
LH: loop header
LB: loop body
LE: loop exit
PB: predicated region body
PF: predicated region fallthrough
CT: control target
= control target key end

     0   :  { %8 = vsyncpa [#allocation3], 0  ;;  %s2004_s0 = inlined_call_operand.vmem [shape: f32[250,12], index: 0, kind: input, shape index: {}]   ;;  %s2005_s1 = inlined_call_operand.vmem [shape: f32[12,128], index: 1, kind: input, shape index: {}]   ;;  %s2006_s2 = inlined_call_operand.vmem [shape: f32[1,128], index: 2, kind: input, shape index: {}]   ;;  %s2007_s3 = inlined_call_operand.hbm [shape: f32[250,128], index: 3, kind: output, shape index: {}]  }
   0x1   :  { %10 = vsyncpa [#allocation3 + $0x1], 0  ;;  %s1773_s12 = smov 0   ;;  %s1775_s13 = smov 0  }
   0x2   :  { %s1777_s14 = smov 0   ;;  %s1779_s15 = smov 0  }
   0x3 LB: > { %s1794_s16 = sadd.s32 4294967295, %s1739_s15   ;;  %s1410_s17 = sadd.s32 4294967294, %s1739_s15   ;;  %s1739_s15 = sphi %s1779_s15, %s2013_s15   ;;  %s1735_s14 = sphi %s1777_s14, %s2012_s14   ;;  %s1731_s13 = sphi %s1775_s13, %s2011_s13   ;;  %s1727_s12 = sphi %s1773_s12, %s2010_s12  }
   0x4   : > { %s1798_s18 = sadd.s32 1, %s1739_s15   ;;  %s91_s19 = sadd.s32 1, %s1735_s14 }
   0x5   : > { %s88_s20 = ssub.s32 %s1739_s15, %s1798_s18  ;;  %p101_p0 = scmp.ne.s32.totalorder %s1735_s14, %s1731_s13 }
   0x6   : > { %p89_p1 = scmp.eq.s32.totalorder %s88_s20, 0  ;;  %p102_p2 = scmp.eq.s32.totalorder %s1794_s16, 15 }
   0x7   : > { %p107_p3 = scmp.ne.s32.totalorder %s1731_s13, %s1727_s12  ;;  %p108_p4 = scmp.eq.s32.totalorder %s1410_s17, 15 }
   0x8   : > { %s1809_s21 = scalar_select %p89_p1, %s1735_s14, %s91_s19  }
   0x9   : > { %p1811_p5 = por %p102_p2, %p101_p0  ;;  %p1815_p6 = por %p108_p4, %p107_p3 }
   0xa   : > { %p1413_p7 = scmp.ge.s32.totalorder %s1739_s15, 1  ;;  %p141_p8 = scmp.lt.s32.totalorder %s1739_s15, 17 }
   0xc   : > { %p142_p9 = pnand %p1413_p7, %p141_p8 }
   0xd   : > { %v173_v0 = vld [vmem:[%s2005_s1] sm:$0xff] (!%p142_p9)  ;;  %v174_v1 = vld [vmem:[%s2005_s1 + $0x8] sm:$0xf] (!%p142_p9)  ;;  %vm186_vm0 = vcmask (!%p142_p9), 1043456   ;;  %v1741_v2 = vmov (!%p142_p9), 0.0|0.0   ;;  %s1415_s30 = sshll.u32 (!%p142_p9), %s1794_s16, 1 }
   0xe   : > { %145 = sbr.rel (%p142_p9) target bundleno = 394 (0x18a), region = 32  ;;  %1553 = vmatprep.subr.bf16.mxu0 (!%p142_p9), %v1741_v2  ;;  %1571 = vmatprep.subr.bf16.mxu1 (!%p142_p9), %v1741_v2  ;;  %v188_v3 = vsel (!%p142_p9), %vm186_vm0, %v174_v1, 0  ;;  %v191_v4 = vand.u32 (!%p142_p9), 4294901760, %v173_v0  ;;  %v756_v5 = vld [vmem:[%s2005_s1 + $0x8] sm:$0xf] (!%p142_p9)  ;;  %vm1742_vm1 = vmmov (!%p142_p9), 0  }
   0xf   : > { %v194_v6 = vand.u32 (!%p142_p9), 4294901760, %v188_v3  ;;  %v768_v7 = vsel (!%p142_p9), %vm186_vm0, %v756_v5, 0  ;;  %v1743_v8 = vmov (!%p142_p9), 0.0   ;;  %p166_p10 = scmp.lt.s32.totalorder (!%p142_p9), %s1415_s30, 31  ;;  %vm182_vm2 = vcmask (!%p142_p9), 97280   ;;  %s162_s10 = sand.u32 (!%p142_p9), 1, %s1731_s13  }
  0x10   : > { %1473 = vmatprep.mubr.msk.f32.mxu0 (!%p142_p9), %vm1742_vm1, %v1743_v8  ;;  %1515 = vmatprep.mubr.msk.f32.mxu1 (!%p142_p9), %vm1742_vm1, %v1743_v8  ;;  %v269_v9 = vsub.f32 (!%p142_p9), %v173_v0, %v191_v4  ;;  %v774_v10 = vand.u32 (!%p142_p9), 4294901760, %v768_v7  ;;  %v1417_v44 = vld [vmem:[%s2006_s2] ss:$0 sm:$0xff] (!%p142_p9)  ;;  %s1414_s11 = sshll.u32 (!%p142_p9), %s162_s10, 4  ;;  %s1432_s19 = sshll.u32 (!%p142_p9), %s1794_s16, 8 }
  0x11   : > { %v1837_v11 = vpack.c.bf16 (!%p142_p9), %v194_v6, %v191_v4  ;;  %v1839_v12 = vsub.f32 (!%p142_p9), %v188_v3, %v194_v6  ;;  %s164_s17 = scalar_lea.vmem (!%p142_p9), [#allocation2], %s1414_s11  ;;  %s1956_s26 = scalar_lea.hbm (!%p142_p9), %s2007_s3, %s1432_s19 }
  0x12   : > { %v1841_v13 = vpack.c.bf16 (!%p142_p9), %v774_v10, %v191_v4  ;;  %v856_v14 = vsub.f32 (!%p142_p9), %v768_v7, %v774_v10  ;;  %v270_v15 = vand.u32 (!%p142_p9), 4294901760, %v269_v9  ;;  %v1744_v7 = vmov (!%p142_p9), 683565275   ;;  %s1348_s20 = sshll.u32 (!%p142_p9), %s164_s17, 4  ;;  %s1963_s16 = scalar_lea.sflag (!%p142_p9), [#allocation3], %s162_s10  ;;  %s1958_s20 = int_to_ptr.vmem [resolvable:$true] %s1348_s20 }
  0x13   : > { %1555 = vmatpush3.bf16.msra.mxu0 (!%p142_p9), %v1837_v11  ;;  %v277_v16 = vand.u32 (!%p142_p9), 4294901760, %v1839_v12  ;;  %v1560_v40 = vpack.c.bf16 (!%p142_p9), %v1839_v12, %v269_v9  ;;  %s1677_s27 = scalar_lea.vmem (!%p142_p9), %s1958_s20, 256  ;;  %s1750_s28 = smov (!%p142_p9), [#allocation2]  }
  0x14   : > { %1573 = vmatpush3.bf16.msra.mxu1 (!%p142_p9), %v1841_v13  ;;  %1556 = vmatprep.subr.bf16.mxu0 (!%p142_p9), %v1741_v2  ;;  %v857_v17 = vand.u32 (!%p142_p9), 4294901760, %v856_v14  ;;  %v271_v19 = vsub.f32 (!%p142_p9), %v269_v9, %v270_v15  ;;  %v1578_v41 = vpack.c.bf16 (!%p142_p9), %v856_v14, %v269_v9  ;;  %p1678_p11 = scmp.ne.s32.totalorder (!%p142_p9), %s1958_s20, %s1677_s27  ;;  %s1681_s29 = sshll.u32 (!%p142_p9), %s1750_s28, 4  ;;  %s1682_s29 = int_to_ptr.vmem [resolvable:$false] %s1681_s29 }
  0x15   : > { %s2015_s30 = smov (!%p166_p10, %s1415_s30), 31  ;;  %1574 = vmatprep.subr.bf16.mxu1 %v1741_v2  ;;  %v278_v22 = vsub.f32 %v1839_v12, %v277_v16  ;;  %v1566_v42 = vpack.c.bf16 %v277_v16, %v270_v15  ;;  %p1684_p0 = scmp.lt.s32.totalorder %s1958_s20, %s1682_s29 }
  0x16   : > { %s1416_s4 = sshll.u32 %s2015_s30, 3  ;;  %v858_v24 = vsub.f32 %v856_v14, %v857_v17  ;;  %v272_v29 = vand.u32 4294901760, %v271_v19  ;;  %v1584_v43 = vpack.c.bf16 %v857_v17, %v270_v15  ;;  %v1747_v15 = vmov 2102212464   ;;  %p1679_p12 = pnand %p1678_p11, %p1811_p5 }
  0x17   : > { %s169_s7 = scalar_lea.vmem %s2004_s0, %s1416_s4  ;;  %v279_v30 = vand.u32 4294901760, %v278_v22  ;;  %v1748_v17 = vmov 920167782   ;;  %s1683_s30 = scalar_lea.vmem %s1682_s29, 512 }
  0x18   : > { %v172_v18 = vld [vmem:[%s169_s7] sm:$0xff]  ;;  %v754_v20 = vld [vmem:[%s169_s7 + $0x8] sm:$0xff]  ;;  %v859_v31 = vand.u32 4294901760, %v858_v24  ;;  %v1749_v24 = vmov 1326507024   ;;  %p1680_p13 = pneg %p1679_p12  ;;  %p1685_p1 = scmp.lt.s32.totalorder %s1683_s30, %s1677_s27 }
  0x19   : > { %v184_v21 = vsel %vm182_vm2, %v172_v18, 0  ;;  %v765_v23 = vsel %vm182_vm2, %v754_v20, 0  ;;  %v1557_v36 = vpack.c.bf16 %v279_v30, %v272_v29 }
  0x1a   : > { %v257_v25 = vand.u32 4294901760, %v184_v21  ;;  %v837_v26 = vand.u32 4294901760, %v765_v23  ;;  %v1575_v37 = vpack.c.bf16 %v859_v31, %v272_v29  ;;  %p1686_p2 = por %p1685_p1, %p1684_p0 }
  0x1c   : > { %v258_v27 = vsub.f32 %v184_v21, %v257_v25  ;;  %v838_v28 = vsub.f32 %v765_v23, %v837_v26  ;;  %p1687_p3 = pnand %p1686_p2, %p1680_p13 }
  0x1e   : > { %v259_v32 = vand.u32 4294901760, %v258_v27  ;;  %v839_v33 = vand.u32 4294901760, %v838_v28 }
  0x20   : > { %v260_v34 = vsub.f32 %v258_v27, %v259_v32  ;;  %v840_v35 = vsub.f32 %v838_v28, %v839_v33 }
  0x22   : > { %v261_v38 = vand.u32 4294901760, %v260_v34  ;;  %v841_v39 = vand.u32 4294901760, %v840_v35 }
  0x24   : > { %1474 = vmatmul.mubr.f32.vlgmr.msra.gmra.mrb[0].mxu0 %v261_v38  ;;  %1516 = vmatmul.mubr.f32.vlgmr.msra.gmra.mrb[0].mxu1 %v841_v39 }
  0x25   : > { %1558 = vmatpush3.bf16.msra.mxu0 %v1557_v36  ;;  %1576 = vmatpush3.bf16.msra.mxu1 %v1575_v37 }
  0x26   : > { %1480 = vmatprep.mubr.msk.f32.mxu0 %vm1742_vm1, %v1743_v8  ;;  %1559 = vmatprep.subr.bf16.mxu0 %v1741_v2 }
  0x27   : > { %1522 = vmatprep.mubr.msk.f32.mxu1 %vm1742_vm1, %v1743_v8  ;;  %1577 = vmatprep.subr.bf16.mxu1 %v1741_v2 }
  0x2c   : > { %1481 = vmatmul.mubr.f32.vlgmr.msra.gmra.mrb[0].mxu0 %v257_v25  ;;  %1523 = vmatmul.mubr.f32.vlgmr.msra.gmra.mrb[0].mxu1 %v837_v26 }
  0x2d   : > { %1561 = vmatpush3.bf16.msra.mxu0 %v1560_v40  ;;  %1579 = vmatpush3.bf16.msra.mxu1 %v1578_v41 }
  0x2e   : > { %1487 = vmatprep.mubr.msk.f32.mxu0 %vm1742_vm1, %v1743_v8  ;;  %1562 = vmatprep.subr.bf16.mxu0 %v1741_v2 }
  0x2f   : > { %1529 = vmatprep.mubr.msk.f32.mxu1 %vm1742_vm1, %v1743_v8  ;;  %1580 = vmatprep.subr.bf16.mxu1 %v1741_v2 }
  0x34   : > { %1488 = vmatmul.mubr.f32.vlgmr.msra.gmra.mrb[0].mxu0 %v258_v27  ;;  %1530 = vmatmul.mubr.f32.vlgmr.msra.gmra.mrb[0].mxu1 %v838_v28 }
  0x35   : > { %1564 = vmatpush3.bf16.msra.mxu0 %v1837_v11  ;;  %1582 = vmatpush3.bf16.msra.mxu1 %v1841_v13 }
  0x36   : > { %1494 = vmatprep.mubr.msk.f32.mxu0 %vm1742_vm1, %v1743_v8  ;;  %1565 = vmatprep.subr.bf16.mxu0 %v1741_v2 }
  0x37   : > { %1536 = vmatprep.mubr.msk.f32.mxu1 %vm1742_vm1, %v1743_v8  ;;  %1583 = vmatprep.subr.bf16.mxu1 %v1741_v2 }
  0x3c   : > { %1495 = vmatmul.mubr.f32.vlgmr.msra.gmra.mrb[0].mxu0 %v259_v32  ;;  %1537 = vmatmul.mubr.f32.vlgmr.msra.gmra.mrb[0].mxu1 %v839_v33 }
  0x3d   : > { %1567 = vmatpush3.bf16.msra.mxu0 %v1566_v42  ;;  %1585 = vmatpush3.bf16.msra.mxu1 %v1584_v43 }
  0x3e   : > { %1501 = vmatprep.mubr.msk.f32.mxu0 %vm1742_vm1, %v1743_v8  ;;  %1568 = vmatprep.subr.bf16.mxu0 %v1741_v2 }
  0x3f   : > { %1543 = vmatprep.mubr.msk.f32.mxu1 %vm1742_vm1, %v1743_v8  ;;  %1586 = vmatprep.subr.bf16.mxu1 %v1741_v2 }
  0x44   : > { %1502 = vmatmul.mubr.f32.vlgmr.msra.gmra.mrb[0].mxu0 %v257_v25  ;;  %1544 = vmatmul.mubr.f32.vlgmr.msra.gmra.mrb[0].mxu1 %v837_v26 }
  0x45   : > { %1570 = vmatpush3.bf16.msra.mxu0 %v1837_v11  ;;  %1588 = vmatpush3.bf16.msra.mxu1 %v1841_v13  ;;  %v1745_v11 = vmov 2475754826   ;;  %v1746_v13 = vmov 2131351028  }
  0x46   : > { %1508 = vmatprep.mubr.msk.f32.mxu0 %vm1742_vm1, %v1743_v8  ;;  %1550 = vmatprep.mubr.msk.f32.mxu1 %vm1742_vm1, %v1743_v8 }
  0x4c   : > { %1509 = vmatmul.mubr.f32.vlgmr.msra.gmra.mrb[0].mxu0 %v257_v25  ;;  %1551 = vmatmul.mubr.f32.vlgmr.msra.gmra.mrb[0].mxu1 %v837_v26 }
 0x11f   : > { %v645_v45 = vpop.f32.mrb[0].mxu0  ;;  %v1225_v46 = vpop.f32.mrb[0].mxu1 }
 0x120   : > { %v1888_v47 = vadd.f32 %v1417_v44, %v645_v45  ;;  %v1890_v48 = vadd.f32 %v1417_v44, %v1225_v46  ;;  %v1510_v49 = vpop.f32.mrb[1].mxu0  ;;  %v1552_v50 = vpop.f32.mrb[1].mxu1 }
 0x122   : > { %v649_v51 = vand.u32 2147483647, %v1888_v47  ;;  %v652_v52 = vand.u32 2139095040, %v1888_v47  ;;  %v1232_v53 = vand.u32 2139095040, %v1890_v48  ;;  %v1229_v56 = vand.u32 2147483647, %v1890_v48 }
 0x123   : > { %vm651_vm1 = vcmp.lt.s32.totalorder %v1888_v47, 0 }
 0x124   : > { %v653_v54 = vshrl.u32 %v652_v52, 23  ;;  %v656_v55 = vand.u32 8388607, %v649_v51  ;;  %v1233_v57 = vshrl.u32 %v1232_v53, 23  ;;  %v1900_v62 = vand.u32 8388607, %v1229_v56 }
 0x125   : > { %vm650_vm2 = vcmp.le.f32.partialorder %v649_v51, 0.7853982 }
 0x126   : > { %v1418_v58 = vadd.s32 4294967169, %v653_v54  ;;  %v1423_v59 = vadd.s32 4294967169, %v1233_v57  ;;  %v657_v61 = vor.u32 8388608, %v656_v55  ;;  %v1237_v5 = vor.u32 8388608, %v1900_v62 }
 0x128   : > { %v659_v60 = vadd.s32 1, %v1418_v58  ;;  %v1239_v63 = vadd.s32 1, %v1423_v59  ;;  %v1902_v4 = vshll.u32 %v657_v61, 8 }
 0x12a   : > { %vm660_vm3 = vcmp.gt.s32.totalorder %v659_v60, 0  ;;  %vm1240_vm4 = vcmp.gt.s32.totalorder %v1239_v63, 0 }
 0x12b   : > { %v661_v0 = vsel %vm660_vm3, %v659_v60, 0  ;;  %v1241_v3 = vsel %vm1240_vm4, %v1239_v63, 0  ;;  %v1277_v63 = vshll.u32 %v1237_v5, 8  ;;  %vm1231_vm3 = vcmp.lt.s32.totalorder %v1890_v48, 0 }
 0x12c   : > { %v662_v1 = vshrl.u32 %v661_v0, 5  ;;  %v663_v2 = vand.u32 31, %v661_v0  ;;  %v1905_v9 = vshrl.u32 %v1241_v3, 5  ;;  %v1243_v10 = vand.u32 31, %v1241_v3 }
 0x12d   : > { %vm1230_vm4 = vcmp.le.f32.partialorder %v1229_v56, 0.7853982 }
 0x12e   : > { %v664_v6 = vsub.s32 32, %v663_v2  ;;  %v666_v8 = vshll.u32 %v1744_v7, %v663_v2  ;;  %v669_v12 = vshll.u32 %v1745_v11, %v663_v2  ;;  %v672_v14 = vshll.u32 %v1746_v13, %v663_v2 }
 0x12f   : > { %v675_v16 = vshll.u32 %v1747_v15, %v663_v2  ;;  %v678_v18 = vshll.u32 %v1748_v17, %v663_v2  ;;  %vm681_vm5 = vcmp.lt.s32.totalorder %v662_v1, 1  ;;  %vm682_vm6 = vcmp.lt.s32.totalorder %v662_v1, 2 }
 0x130   : > { %v667_v19 = vshrl.u32 %v1745_v11, %v664_v6  ;;  %v670_v20 = vshrl.u32 %v1746_v13, %v664_v6  ;;  %v673_v21 = vshrl.u32 %v1747_v15, %v664_v6  ;;  %v665_v22 = vshrl.u32 %v1744_v7, %v664_v6 }
 0x131   : > { %v676_v23 = vshrl.u32 %v1748_v17, %v664_v6  ;;  %v679_v25 = vshrl.u32 %v1749_v24, %v664_v6  ;;  %v1244_v29 = vsub.s32 32, %v1243_v10  ;;  %vm683_vm7 = vcmp.lt.s32.totalorder %v662_v1, 3 }
 0x132   : > { %v668_v26 = vor.u32 %v667_v19, %v666_v8  ;;  %v671_v27 = vor.u32 %v670_v20, %v669_v12  ;;  %v674_v28 = vor.u32 %v673_v21, %v672_v14  ;;  %vm684_vm8 = vcmp.lt.s32.totalorder %v662_v1, 4 }
 0x133   : > { %v677_v30 = vor.u32 %v676_v23, %v675_v16  ;;  %v680_v31 = vor.u32 %v679_v25, %v678_v18  ;;  %v1246_v39 = vshll.u32 %v1744_v7, %v1243_v10  ;;  %v1247_v42 = vshrl.u32 %v1745_v11, %v1244_v29 }
 0x134   : > { %v685_v32 = vsel %vm681_vm5, %v665_v22, %v668_v26  ;;  %v686_v33 = vsel %vm684_vm8, %v674_v28, 2102212464  ;;  %v689_v34 = vsel %vm681_vm5, %v668_v26, %v671_v27  ;;  %v693_v35 = vsel %vm681_vm5, %v671_v27, %v674_v28 }
 0x135   : > { %v687_v36 = vsel %vm683_vm7, %v671_v27, %v686_v33  ;;  %v690_v37 = vsel %vm684_vm8, %v677_v30, 920167782  ;;  %v694_v38 = vsel %vm684_vm8, %v680_v31, 1326507024  ;;  %v1249_v43 = vshll.u32 %v1745_v11, %v1243_v10 }
 0x136   : > { %v691_v40 = vsel %vm683_vm7, %v674_v28, %v690_v37  ;;  %v695_v41 = vsel %vm683_vm7, %v677_v30, %v694_v38  ;;  %v688_v44 = vsel %vm682_vm6, %v685_v32, %v687_v36  ;;  %v1250_v49 = vshrl.u32 %v1746_v13, %v1244_v29 }
 0x137   : > { %v692_v45 = vsel %vm682_vm6, %v689_v34, %v691_v40  ;;  %v696_v46 = vsel %vm682_vm6, %v693_v35, %v695_v41  ;;  %v1248_v55 = vor.u32 %v1247_v42, %v1246_v39  ;;  %v1252_v58 = vshll.u32 %v1746_v13, %v1243_v10 }
 0x138   : > { %v1914_v50 = vmul.u32.u64.low %v1902_v4, %v696_v46  ;;  %v1915_v52 = vmul.u32.u64.high %v1902_v4, %v696_v46, %v1914_v50  ;;  %v1918_v53 = vmul.u32.u64.low %v1902_v4, %v692_v45  ;;  %v1919_v54 = vmul.u32.u64.high %v1902_v4, %v692_v45, %v1918_v53 }
 0x139   : > { %v1251_v57 = vor.u32 %v1250_v49, %v1249_v43  ;;  %v1253_v59 = vshrl.u32 %v1747_v15, %v1244_v29  ;;  %v1255_v60 = vshll.u32 %v1747_v15, %v1243_v10  ;;  %v1256_v61 = vshrl.u32 %v1748_v17, %v1244_v29 }
 0x13a   : > { %v1259_v62 = vshrl.u32 %v1749_v24, %v1244_v29  ;;  %v704_v0 = vmul.u32 %v1902_v4, %v688_v44  ;;  %v1245_v1 = vshrl.u32 %v1744_v7, %v1244_v29  ;;  %v1258_v3 = vshll.u32 %v1748_v17, %v1243_v10 }
 0x13b   : > { %v1254_v2 = vor.u32 %v1253_v59, %v1252_v58  ;;  %vm706_vm9 = vc.u32 %v1915_v52, %v1918_v53  ;;  %v707_v6 = vadd.s32 1, %v1919_v54  ;;  %v1257_v8 = vor.u32 %v1256_v61, %v1255_v60 }
 0x13c   : > { %vm1261_vm10 = vcmp.lt.s32.totalorder %v1905_v9, 1  ;;  %v1260_v11 = vor.u32 %v1259_v62, %v1258_v3  ;;  %vm1263_vm11 = vcmp.lt.s32.totalorder %v1905_v9, 3  ;;  %vm1264_vm12 = vcmp.lt.s32.totalorder %v1905_v9, 4 }
 0x13d   : > { %v1269_v12 = vsel %vm1261_vm10, %v1248_v55, %v1251_v57  ;;  %v708_v5 = vsel %vm706_vm9, %v707_v6, %v1919_v54  ;;  %v1266_v13 = vsel %vm1264_vm12, %v1254_v2, 2102212464  ;;  %v1270_v4 = vsel %vm1264_vm12, %v1257_v8, 920167782 }
 0x13e   : > { %v1273_v7 = vsel %vm1261_vm10, %v1251_v57, %v1254_v2  ;;  %v709_v14 = vadd.s32 %v708_v5, %v704_v0  ;;  %vm1262_vm13 = vcmp.lt.s32.totalorder %v1905_v9, 2  ;;  %v1271_v10 = vsel %vm1263_vm11, %v1254_v2, %v1270_v4 }
 0x13f   : > { %v1274_v15 = vsel %vm1264_vm12, %v1260_v11, 1326507024  ;;  %v1265_v16 = vsel %vm1261_vm10, %v1245_v1, %v1248_v55  ;;  %v1267_v17 = vsel %vm1263_vm11, %v1251_v57, %v1266_v13  ;;  %v1272_v18 = vsel %vm1262_vm13, %v1269_v12, %v1271_v10 }
 0x140   : > { %v1275_v19 = vsel %vm1263_vm11, %v1257_v8, %v1274_v15  ;;  %v710_v20 = vadd.s32 536870912, %v709_v14  ;;  %v1929_v22 = vmul.u32.u64.low %v1277_v63, %v1272_v18  ;;  %v1930_v23 = vmul.u32.u64.high %v1277_v63, %v1272_v18, %v1929_v22 }
 0x141   : > { %v1276_v21 = vsel %vm1262_vm13, %v1273_v7, %v1275_v19  ;;  %v1268_v27 = vsel %vm1262_vm13, %v1265_v16, %v1267_v17  ;;  %v705_v43 = vadd.s32 %v1918_v53, %v1915_v52  ;;  %vm741_vm8 = vweird.f32 %v1888_v47 }
 0x142   : > { %v1932_v24 = vmul.u32.u64.low %v1277_v63, %v1276_v21  ;;  %v1933_v25 = vmul.u32.u64.high %v1277_v63, %v1276_v21, %v1932_v24  ;;  %v711_v26 = vshrl.u32 %v710_v20, 30  ;;  %v1287_v29 = vadd.s32 1, %v1930_v23 }
 0x143   : > { %v1284_v9 = vmul.u32 %v1277_v63, %v1268_v27  ;;  %vm1321_vm12 = vweird.f32 %v1890_v48 }
 0x144   : > { %v712_v28 = vshll.u32 %v711_v26, 30  ;;  %vm1286_vm14 = vc.u32 %v1933_v25, %v1929_v22  ;;  %v1285_v0 = vadd.s32 %v1929_v22, %v1933_v25  ;;  %v735_v53 = vsub.s32 4, %v711_v26 }
 0x145   : > { %v1288_v31 = vsel %vm1286_vm14, %v1287_v29, %v1930_v23 }
 0x146   : > { %v713_v30 = vsub.s32 %v709_v14, %v712_v28  ;;  %v1289_v32 = vadd.s32 %v1288_v31, %v1284_v9  ;;  %v736_v4 = vsel %vm651_vm1, %v735_v53, %v711_v26 }
 0x147   : > { %v738_v10 = vsel %vm650_vm2, 0, %v736_v4 }
 0x148   : > { %v715_v33 = vsub.s32 0, %v713_v30  ;;  %v1290_v34 = vadd.s32 536870912, %v1289_v32  ;;  %v742_v19 = vadd.s32 3, %v738_v10 }
 0x14a   : > { %v1419_v35 = vmin.u32 %v715_v33, %v713_v30  ;;  %v1291_v36 = vshrl.u32 %v1290_v34, 30  ;;  %v743_v22 = vand.u32 3, %v742_v19 }
 0x14c   : > { %v717_v37 = vclz %v1419_v35  ;;  %v1292_v38 = vshll.u32 %v1291_v36, 30  ;;  %v1315_v18 = vsub.s32 4, %v1291_v36  ;;  %vm748_vm5 = vcmp.eq.s32.totalorder %v743_v22, 2 }
 0x14d   : > { %vm745_vm6 = vcmp.eq.s32.totalorder %v743_v22, 0  ;;  %vm744_vm7 = vcmp.lt.s32.totalorder %v743_v22, 2 }
 0x14e   : > { %v1420_v39 = vadd.s32 4294967294, %v717_v37  ;;  %v1293_v40 = vsub.s32 %v1289_v32, %v1292_v38  ;;  %v1316_v21 = vsel %vm1231_vm3, %v1315_v18, %v1291_v36 }
 0x14f   : > { %v1318_v25 = vsel %vm1230_vm4, 0, %v1316_v21 }
 0x150   : > { %vm1421_vm15 = vcmp.lt.s32.totalorder %v1420_v39, 0  ;;  %v1295_v42 = vsub.s32 0, %v1293_v40  ;;  %v1322_v29 = vadd.s32 3, %v1318_v25 }
 0x151   : > { %v720_v41 = vsel %vm1421_vm15, 0, %v1420_v39 }
 0x152   : > { %v721_v44 = vsub.s32 32, %v720_v41  ;;  %v725_v45 = vsub.s32 4294967266, %v720_v41  ;;  %v1424_v46 = vmin.u32 %v1295_v42, %v1293_v40  ;;  %v722_v49 = vshll.u32 %v713_v30, %v720_v41 }
 0x153   : > { %v1323_v32 = vand.u32 3, %v1322_v29 }
 0x154   : > { %v723_v50 = vshrl.u32 %v705_v43, %v721_v44  ;;  %v726_v54 = vadd.s32 127, %v725_v45  ;;  %v1297_v55 = vclz %v1424_v46 }
 0x155   : > { %vm1328_vm9 = vcmp.eq.s32.totalorder %v1323_v32, 2  ;;  %vm1325_vm10 = vcmp.eq.s32.totalorder %v1323_v32, 0  ;;  %vm1324_vm11 = vcmp.lt.s32.totalorder %v1323_v32, 2 }
 0x156   : > { %v724_v57 = vor.u32 %v723_v50, %v722_v49  ;;  %v727_v58 = vshll.u32 %v726_v54, 23  ;;  %v1425_v59 = vadd.s32 4294967294, %v1297_v55 }
 0x158   : > { %v728_v60 = vor.u32 4788187, %v727_v58  ;;  %vm1426_vm0 = vcmp.lt.s32.totalorder %v1425_v59, 0  ;;  %v731_v62 = vcvt.s32.f32 %v724_v57 }
 0x159   : > { %v1300_v63 = vsel %vm1426_vm0, 0, %v1425_v59 }
 0x15a   : > { %v729_v61 = vand.u32 2147483647, %v728_v60  ;;  %v1301_v1 = vsub.s32 32, %v1300_v63  ;;  %v1305_v2 = vsub.s32 4294967266, %v1300_v63  ;;  %v1302_v3 = vshll.u32 %v1293_v40, %v1300_v63 }
 0x15c   : > { %v732_v52 = vmul.f32 %v731_v62, %v729_v61  ;;  %v1303_v6 = vshrl.u32 %v1285_v0, %v1301_v1  ;;  %v1306_v8 = vadd.s32 127, %v1305_v2 }
 0x15e   : > { %v733_v11 = vxor.u32 2147483648, %v732_v52  ;;  %v1304_v12 = vor.u32 %v1303_v6, %v1302_v3  ;;  %v1307_v5 = vshll.u32 %v1306_v8, 23 }
 0x160   : > { %v734_v13 = vsel %vm651_vm1, %v733_v11, %v732_v52  ;;  %v1308_v14 = vor.u32 4788187, %v1307_v5  ;;  %v1311_v16 = vcvt.s32.f32 %v1304_v12 }
 0x161   : > { %v737_v7 = vsel %vm650_vm2, %v1888_v47, %v734_v13 }
 0x162   : > { %1669 = vcosq.f32 %v737_v7  ;;  %v1309_v15 = vand.u32 2147483647, %v1308_v14 }
 0x163   : > { %1671 = vsinq.f32 %v737_v7 }
 0x164   : > { %v1312_v17 = vmul.f32 %v1311_v16, %v1309_v15 }
 0x166   : > { %v1313_v20 = vxor.u32 2147483648, %v1312_v17 }
 0x168   : > { %v1314_v51 = vsel %vm1231_vm3, %v1313_v20, %v1312_v17 }
 0x169   : > { %v1317_v23 = vsel %vm1230_vm4, %v1890_v48, %v1314_v51 }
 0x16a   : > { %1673 = vcosq.f32 %v1317_v23 }
 0x16b   : > { %1675 = vsinq.f32 %v1317_v23 }
 0x16c   : > { %v1670_v24 = vpop.eup %1669 }
 0x16d   : > { %v1672_v26 = vpop.eup %1671  ;;  %v749_v27 = vxor.u32 2147483648, %v1670_v24 }
 0x16e   : > { %v746_v28 = vxor.u32 2147483648, %v1672_v26 }
 0x16f   : > { %v750_v56 = vsel %vm748_vm5, %v749_v27, %v1672_v26 }
 0x170   : > { %v747_v9 = vsel %vm745_vm6, %v1670_v24, %v746_v28 }
 0x171   : > { %v751_v30 = vsel %vm744_vm7, %v747_v9, %v750_v56 }
 0x172   : > { %v752_v31 = vsel %vm741_vm8, nan, %v751_v30 }
 0x173   : > { %753 = vst [vmem:[%s164_s17] sm:$0xff] %v752_v31 }
 0x174   : > { %v1674_v33 = vpop.eup %1673 }
 0x175   : > { %v1676_v34 = vpop.eup %1675  ;;  %v1329_v35 = vxor.u32 2147483648, %v1674_v33 }
 0x176   : > { %v1326_v36 = vxor.u32 2147483648, %v1676_v34 }
 0x177   : > { %v1330_v37 = vsel %vm1328_vm9, %v1329_v35, %v1676_v34 }
 0x178   : > { %v1327_v38 = vsel %vm1325_vm10, %v1674_v33, %v1326_v36 }
 0x179   : > { %v1331_v47 = vsel %vm1324_vm11, %v1327_v38, %v1330_v37 }
 0x17a   : > { %v1332_v39 = vsel %vm1321_vm12, nan, %v1331_v47 }
 0x17b   : > { %1333 = vst [vmem:[%s164_s17 + $0x8] sm:$0xff] %v1332_v39 }
 0x17c   : > { %1690 = shalt.err (!%p1687_p3)
}
 0x17d   : > { %s1691_s4 = scalar_lea.hbm %s1956_s26, 256  ;;  %s1695_s7 = scalar_lea.hbm %s2007_s3, 4096 }
 0x17e   : > { %p1692_p4 = scmp.ne.s32.totalorder %s1956_s26, %s1691_s4  ;;  %p1696_p9 = scmp.lt.u32.totalorder %s1956_s26, %s2007_s3 }
 0x17f   : > { %p1697_p10 = scmp.lt.u32.totalorder %s1695_s7, %s1691_s4  ;;  %p1699_p12 = scmp.lt.u32.totalorder %s1691_s4, %s1956_s26 }
 0x180   : > { %p1693_p7 = pnand %p1692_p4, %p1811_p5 }
 0x181   : > { %p1698_p11 = por %p1697_p10, %p1696_p9 }
 0x182   : > { %p1694_p8 = pneg %p1693_p7 }
 0x183   : > { %p1700_p13 = por %p1699_p12, %p1698_p11 }
 0x185   : > { %p1701_p0 = pnand %p1700_p13, %p1694_p8 }
 0x187   : > { %1704 = shalt.err (!%p1701_p0)
}
 0x188   : > { %s1751_s10 = smov 128   ;;  %s1752_s11 = smov 8  }
 0x189   : > { %1619 = dma.vmem_to_hbm [thread:$0]  (%p1811_p5), %s1958_s20, 256, %s1956_s26, %s1963_s16, %s1751_s10, %s1751_s10, %s1752_s11  }
 0x18a PF: > { %p1625_p1 = scmp.ge.s32.totalorder %s1739_s15, 2  ;;  %s1363_s17 = sand.u32 1, %s1727_s12  }
 0x18b   : > { %s1364_s19 = scalar_lea.sflag [#allocation3], %s1363_s17 }
 0x18c   : > { %p1622_p2 = pnand %p1625_p1, %p1815_p6 }
 0x18e   : > { %1722 = dma.done.wait (!%p1622_p2), %s1364_s19, 256  }
 0x18f   : > { %1724 = vsyncadd (!%p1622_p2), %s1364_s19, 4294967040  ;;  %p13_p3 = scmp.ge.s32.totalorder %s1798_s18, 18   ;;  %s2010_s12 = smov %s1731_s13 }
 0x190   : > { %s2011_s13 = smov %s1735_s14  ;;  %s2012_s14 = smov %s1809_s21 }
 0x191   : > { %s2013_s15 = smov %s1798_s18  ;;  %15 = sbr.rel (!%p13_p3) target bundleno = 3 (0x3), region = 67 }
 0x198   :  { %1369 = vsyncpa [#allocation3], 1 }
 0x199   :  { %1371 = vsyncpa [#allocation3 + $0x1], 1 }

</bundles_post_ra>
